<compile_context>
chip_gen: v6e
topology: v6e:2x2x1
jax: 0.10.0
libtpu: 0.0.40
codegen_flags: <defaults>
</compile_context>

<pallas_src>
import functools

import jax
import jax.numpy as jnp
import numpy as np
from jax.experimental import pallas as pl
from jax.experimental.pallas import tpu as pltpu


# -----------------------------------------------------------------------------
# Kernel 1: masked-softmax attention weights over the question embeddings.
#   scores[b, t] = <w, emb[b, t, :]>  (elementwise multiply + lane reduce, no N=1 matmul)
#   p = softmax over t with mask, guarded denominator (no NaN on fully-masked rows).
# -----------------------------------------------------------------------------
def _attn_weights_kernel(emb_ref, mask_ref, w_ref, p_ref):
    e = emb_ref[...]                                    # (bb, T, D)
    w = w_ref[...]                                      # (1, D)
    valid = (mask_ref[...] > 0).astype(jnp.float32)     # (bb, T)
    s = jnp.sum(e * w[None, :, :], axis=-1)             # (bb, T)  VPU mult + XLU reduce
    s = jnp.where(valid > 0.0, s, jnp.full_like(s, -1e30))
    s_max = jnp.max(s, axis=-1, keepdims=True)
    p = jnp.exp(s - s_max) * valid
    denom = jnp.maximum(jnp.sum(p, axis=-1, keepdims=True), 1e-30)
    p_ref[...] = p / denom


def attention_weights(emb_btd, mask_bt, w_attn):
    """emb_btd: [B,T,D] f32; mask_bt: [B,T] int; w_attn: [1,D]. Returns p: [B,T] f32."""
    B, T, D = emb_btd.shape
    bb = B if (B <= 8 or B % 8 != 0) else 8             # tile-friendly batch blocks
    return pl.pallas_call(
        _attn_weights_kernel,
        out_shape=jax.ShapeDtypeStruct((B, T), jnp.float32),
        grid=(B // bb,),
        in_specs=[
            pl.BlockSpec((bb, T, D), lambda b: (b, 0, 0)),
            pl.BlockSpec((bb, T), lambda b: (b, 0)),
            pl.BlockSpec((1, D), lambda b: (0, 0)),
        ],
        out_specs=pl.BlockSpec((bb, T), lambda b: (b, 0)),
        compiler_params=pltpu.CompilerParams(dimension_semantics=("parallel",)),
    )(emb_btd, mask_bt.astype(jnp.int32), w_attn)


# -----------------------------------------------------------------------------
# Kernel 2: fused bidirectional LSTM layer + attention pooling, T-chunked & batch-parallel.
#
# Host-prepared layout (see fuse_params / _gate_panels):
#   gx  [T, B, 8H]  : x @ Wih + b, gate columns [i_f,i_b,f_f,f_b,o_f,o_b,g_f,g_b];
#                     fwd columns at real time t, bwd columns already TIME-REVERSED so
#                     loop step t reads a single contiguous row.
#   whh [2H, 8H]    : block-diagonal fused recurrent weights (rows 0:H act on h_fwd,
#                     rows H:2H on h_bwd), same column order.
#   p2  [T, B, 2]   : attention weights; [:,:,0]=p(t) for fwd half, [:,:,1]=p(T-1-t) for bwd.
#   len [B, 1] i32  : sequence lengths.
# Outputs:
#   seq  [T, B, 2H] : per-step outputs; fwd half in real time, bwd half in loop (reversed)
#                     time — one contiguous lane-dense store per step; next layer un-reverses.
#   pool [B, 2H]    : sum_t p[b,t] * [h_fwd(t) | h_bwd(t)]   (fused in-loop).
# -----------------------------------------------------------------------------
def _largest_divisor_at_most(n, cap):
    cap = max(1, min(n, int(cap)))
    for d in range(cap, 0, -1):
        if n % d == 0:
            return d
    return 1


def _batch_block(B):
    # Two tile-aligned batch blocks when possible -> the "parallel" axis lets the two v7x
    # TensorCores take half the batch each (neutral on v5e/v6e).
    if B % 16 == 0:
        return B // 2
    return B


def _auto_time_chunk(T, bB, H2, itemsize):
    # Keep the double-buffered gx/seq chunks around ~12 MiB so chunk k+1's DMA overlaps
    # chunk k's recurrence well inside the 48 MiB vmem limit below.
    per_step = bB * (4 * H2 + H2) * itemsize            # gx row (8H) + seq row (2H)
    budget = (12 * 1024 * 1024) // 2                    # /2 for double buffering
    return max(1, min(T, budget // max(per_step, 1)))


def bilstm_layer(gx_tbg, lengths_b1, whh_fused, p2_tb2, *, time_chunk=None):
    """gx_tbg: [T,B,8H]; lengths_b1: [B,1] i32; whh_fused: [2H,8H]; p2_tb2: [T,B,2]."""
    T, B, G = gx_tbg.shape
    H2 = G // 4                                          # 2H
    H = H2 // 2
    bB = _batch_block(B)
    nB = B // bB
    if time_chunk is None:
        time_chunk = _auto_time_chunk(T, bB, H2, jnp.dtype(gx_tbg.dtype).itemsize)
    cT = _largest_divisor_at_most(T, time_chunk)
    nT = T // cT

    def kernel(len_ref, gx_ref, whh_ref, p2_ref, seq_ref, pool_ref, h_sc, c_sc):
        k = pl.program_id(1)                             # time-chunk index

        @pl.when(k == 0)
        def _init():
            h_sc[...] = jnp.zeros_like(h_sc)
            c_sc[...] = jnp.zeros_like(c_sc)
            pool_ref[...] = jnp.zeros_like(pool_ref)

        lengths = len_ref[...]                           # (bB, 1) int32
        whh = whh_ref[...]                               # (2H, 8H) resident (same block all grid)
        is_fwd = jax.lax.broadcasted_iota(jnp.int32, (1, H2), 1) < H   # hoisted out of the loop
        t0 = k * cT

        def step(tt, carry):
            h, c, pooled = carry                         # (bB, 2H) f32 each
            t = t0 + tt                                  # fwd real time
            rt = (T - 1) - t                             # bwd real time
            # One contiguous (bB,8H) gx load + one fused (bB,2H)x(2H,8H) MXU matmul per step.
            gates = gx_ref[tt].astype(jnp.float32) + jnp.dot(
                h.astype(whh.dtype), whh, preferred_element_type=jnp.float32)
            # TODO(synk): on v5e consider two (bB,H)x(H,4H) matmuls instead of the fused
            # block-diagonal form (50% structural zeros waste K on its 128-wide MXU).
            sig = jax.nn.sigmoid(gates[:, : 3 * H2])     # one EUP slab: [i | f | o]
            i_g = sig[:, 0 * H2:1 * H2]
            f_g = sig[:, 1 * H2:2 * H2]
            o_g = sig[:, 2 * H2:3 * H2]
            g_g = jnp.tanh(gates[:, 3 * H2:])
            c_new = f_g * c + i_g * g_g
            h_new = o_g * jnp.tanh(c_new)

            # pack_padded_sequence equivalent: padded steps keep previous state, outputs zero.
            t_eff = jnp.where(is_fwd, t, rt)             # (1, 2H)
            m = (t_eff < lengths).astype(jnp.float32)    # (bB, 2H)
            h = m * h_new + (1.0 - m) * h
            c = m * c_new + (1.0 - m) * c
            out_t = m * h_new

            seq_ref[tt] = out_t.astype(seq_ref.dtype)    # single contiguous (bB,2H) store

            # Fused attention pooling (f32 accumulation).
            p_row = p2_ref[tt]                           # (bB, 2)
            p_comb = jnp.where(is_fwd, p_row[:, 0:1], p_row[:, 1:2])   # (bB, 2H)
            pooled = pooled + p_comb * out_t
            return (h, c, pooled)

        carry0 = (h_sc[...], c_sc[...], jnp.zeros((bB, H2), jnp.float32))
        h, c, pooled = jax.lax.fori_loop(0, cT, step, carry0)
        h_sc[...] = h                                    # carry state to the next chunk
        c_sc[...] = c
        pool_ref[...] += pooled                          # resident accumulator across chunks

    return pl.pallas_call(
        kernel,
        out_shape=(
            jax.ShapeDtypeStruct((T, B, H2), gx_tbg.dtype),   # seq (panel dtype)
            jax.ShapeDtypeStruct((B, H2), jnp.float32),       # pooled [fwd | bwd]
        ),
        grid=(nB, nT),
        in_specs=[
            pl.BlockSpec((bB, 1), lambda b, k: (b, 0)),
            pl.BlockSpec((cT, bB, G), lambda b, k: (k, b, 0)),
            pl.BlockSpec((H2, G), lambda b, k: (0, 0)),
            pl.BlockSpec((cT, bB, 2), lambda b, k: (k, b, 0)),
        ],
        out_specs=(
            pl.BlockSpec((cT, bB, H2), lambda b, k: (k, b, 0)),
            pl.BlockSpec((bB, H2), lambda b, k: (b, 0)),
        ),
        scratch_shapes=[
            pltpu.VMEM((bB, H2), jnp.float32),           # h carry
            pltpu.VMEM((bB, H2), jnp.float32),           # c carry
        ],
        compiler_params=pltpu.CompilerParams(
            dimension_semantics=("parallel", "arbitrary"),
            vmem_limit_bytes=48 * 1024 * 1024,
        ),
    )(lengths_b1, gx_tbg, whh_fused, p2_tb2)


# -----------------------------------------------------------------------------
# Host-side gate-panel construction (projection matmuls stay in XLA).
# -----------------------------------------------------------------------------
def _interleave_gates(gf, gb_rev, H):
    """gf, gb_rev: [T,B,4H] with per-direction gate order [i,f,o,g] -> [T,B,8H] interleaved."""
    T, B, _ = gf.shape
    g = jnp.stack([gf.reshape(T, B, 4, H), gb_rev.reshape(T, B, 4, H)], axis=3)
    return g.reshape(T, B, 8 * H)


def question_encoding_forward(params, question_embedded, question_lengths, question_mask,
                              *, panel_dtype=jnp.float32, time_chunk=None):
    """question_embedded: [B,T,D] f32; question_lengths: [B] i32; question_mask: [B,T] int.
    Returns [B, n_layers * hidden_size * 2] f32."""
    B, T, D = question_embedded.shape
    lengths = question_lengths.astype(jnp.int32).reshape(B, 1)

    # Attention weights (Pallas kernel), then laid out for the fused in-loop pooling:
    # column 0 = p at forward loop time, column 1 = p at reversed loop time.
    p_bt = attention_weights(question_embedded, question_mask, params["w_attn"])
    p_tb = jnp.transpose(p_bt)                                   # [T, B]
    p2 = jnp.stack([p_tb, p_tb[::-1]], axis=-1)                  # [T, B, 2]

    pooled_parts = []
    seq_prev = None
    for li, lp in enumerate(params["layers"]):
        H = lp["whh"].shape[0] // 2
        if li == 0:
            # Time-major gate panels straight from the [B,T,D] embeddings (no host transpose).
            gf = jnp.einsum("btd,dg->tbg", question_embedded, lp["wih_f"]) + lp["b_f"]
            gb_rev = (jnp.einsum("btd,dg->tbg", question_embedded, lp["wih_b"]) + lp["b_b"])[::-1]
        else:
            # seq_prev: [T,B,2H_in], fwd half in real time, bwd half time-reversed.
            h_in = seq_prev.shape[-1] // 2
            x_full = jnp.concatenate([seq_prev[:, :, :h_in], seq_prev[::-1, :, h_in:]], axis=-1)
            gf = jnp.einsum("tbf,fg->tbg", x_full, lp["wih_f"]) + lp["b_f"]
            gb_rev = jnp.einsum("tbf,fg->tbg", x_full[::-1], lp["wih_b"]) + lp["b_b"]
        gx = _interleave_gates(gf, gb_rev, H).astype(panel_dtype)
        whh = lp["whh"].astype(panel_dtype)
        # TODO(synk): inter-layer dropout omitted (identity in eval mode).
        seq_prev, pooled = bilstm_layer(gx, lengths, whh, p2, time_chunk=time_chunk)
        pooled_parts.append(pooled)                              # [B, 2H] per layer

    return jnp.concatenate(pooled_parts, axis=-1)                # [B, n_layers*2H]


# -----------------------------------------------------------------------------
# Parameters: raw PyTorch-style weights + one-time host-side fusion into kernel layout.
# -----------------------------------------------------------------------------
def init_params(key, embedding_size, hidden_size, n_layers):
    """Raw params: per layer/direction W_ih (4H, Din), W_hh (4H, H), b (4H,) [i,f,g,o]."""
    params = {"layers": []}
    scale = 1.0 / np.sqrt(hidden_size)
    d_in = embedding_size
    for _ in range(n_layers):
        layer = {}
        for direction in ("fwd", "bwd"):
            key, k1, k2, k3 = jax.random.split(key, 4)
            w_ih = scale * jax.random.normal(k1, (4 * hidden_size, d_in), jnp.float32)
            w_hh = scale * jax.random.normal(k2, (4 * hidden_size, hidden_size), jnp.float32)
            b = scale * jax.random.normal(k3, (4 * hidden_size,), jnp.float32)  # b_ih + b_hh
            layer[direction] = (w_ih, w_hh, b)
        params["layers"].append(layer)
        d_in = 2 * hidden_size
    key, kw = jax.random.split(key)
    params["w_attn"] = scale * jax.random.normal(kw, (1, embedding_size), jnp.float32)
    return params


def fuse_params(raw, hidden_size):
    """Pre-transpose + fuse fwd/bwd weights into the kernel layout (once, host side).

    Per-direction input projections wih_{f,b}: (Din, 4H) with gate column order [i, f, o, g]
    (sigmoid gates adjacent, tanh gate last); biases b_{f,b}: (1, 4H).
    Fused recurrent whh: (2H, 8H), columns [i_f,i_b,f_f,f_b,o_f,o_b,g_f,g_b], rows 0:H act on
    h_fwd and rows H:2H on h_bwd (block diagonal).
    """
    H = hidden_size
    gate_order = (0, 1, 3, 2)     # PyTorch row blocks [i, f, g, o] -> kernel order [i, f, o, g]
    fused = {"w_attn": raw["w_attn"], "layers": []}
    for layer in raw["layers"]:
        wih_f_raw, whh_f_raw, b_f_raw = layer["fwd"]
        wih_b_raw, whh_b_raw, b_b_raw = layer["bwd"]

        def cols(w, g):
            return w[g * H:(g + 1) * H].T                # (Din|H, H)

        wih_f = jnp.concatenate([cols(wih_f_raw, g) for g in gate_order], axis=1)
        wih_b = jnp.concatenate([cols(wih_b_raw, g) for g in gate_order], axis=1)
        b_f = jnp.concatenate([b_f_raw[g * H:(g + 1) * H] for g in gate_order])[None, :]
        b_b = jnp.concatenate([b_b_raw[g * H:(g + 1) * H] for g in gate_order])[None, :]

        zero = jnp.zeros((H, H), jnp.float32)
        whh_blocks = []
        for g in gate_order:
            whh_blocks.append(jnp.concatenate([cols(whh_f_raw, g), zero], axis=0))  # fwd cols
            whh_blocks.append(jnp.concatenate([zero, cols(whh_b_raw, g)], axis=0))  # bwd cols
        whh = jnp.concatenate(whh_blocks, axis=1)        # (2H, 8H)

        fused["layers"].append(
            {"wih_f": wih_f, "wih_b": wih_b, "b_f": b_f, "b_b": b_b, "whh": whh})
    return fused


# -----------------------------------------------------------------------------
# Pure-JAX reference (uses the raw, unfused weights).
# -----------------------------------------------------------------------------
def _lstm_dir_ref(x, m, w_ih, w_hh, b, reverse):
    T, B, _ = x.shape
    H = w_hh.shape[1]

    def step(carry, inp):
        h, c = carry
        x_t, m_t = inp
        gates = x_t @ w_ih.T + jnp.dot(h, w_hh.T, precision=jax.lax.Precision.HIGHEST) + b
        i_g = jax.nn.sigmoid(gates[:, :H])
        f_g = jax.nn.sigmoid(gates[:, H:2 * H])
        g_g = jnp.tanh(gates[:, 2 * H:3 * H])
        o_g = jax.nn.sigmoid(gates[:, 3 * H:])
        c_new = f_g * c + i_g * g_g
        h_new = o_g * jnp.tanh(c_new)
        h2 = m_t * h_new + (1.0 - m_t) * h
        c2 = m_t * c_new + (1.0 - m_t) * c
        return (h2, c2), h_new * m_t

    xs = (x[::-1], m[::-1]) if reverse else (x, m)
    init = (jnp.zeros((B, H), jnp.float32), jnp.zeros((B, H), jnp.float32))
    _, outs = jax.lax.scan(step, init, xs)
    return outs[::-1] if reverse else outs


def reference_forward(raw_params, question_embedded, question_mask):
    mask_f = question_mask.astype(jnp.float32)
    x = jnp.transpose(question_embedded, (1, 0, 2))
    m = jnp.transpose(mask_f, (1, 0))[:, :, None]
    outs = []
    layer_in = x
    for lp in raw_params["layers"]:
        fwd = _lstm_dir_ref(layer_in, m, *lp["fwd"], reverse=False)
        bwd = _lstm_dir_ref(layer_in, m, *lp["bwd"], reverse=True)
        out = jnp.concatenate([fwd, bwd], axis=-1)
        outs.append(out)
        layer_in = out
    lstm_btf = jnp.transpose(jnp.concatenate(outs, axis=-1), (1, 0, 2))    # [B,T,F]

    scores = jnp.einsum("btd,d->bt", question_embedded, raw_params["w_attn"][0])
    scores = jnp.where(mask_f != 0.0, scores, -jnp.inf)
    attn = jax.nn.softmax(scores, axis=-1)
    return jnp.einsum("bt,btf->bf", attn, lstm_btf)


# -----------------------------------------------------------------------------
if __name__ == "__main__":
    # Case 1 & 2: the original small, module-consistent shapes.
    B, T, D, H, L = 2, 8, 32, 16, 2
    key = jax.random.PRNGKey(0)
    k_emb, k_param = jax.random.split(key)
    emb = jax.random.normal(k_emb, (B, T, D), jnp.float32)
    lengths = jnp.array([T, T - 3], dtype=jnp.int32)
    mask = (jnp.arange(T)[None, :] < lengths[:, None]).astype(jnp.int32)
    raw = init_params(k_param, D, H, L)
    fused = fuse_params(raw, H)
    ref = reference_forward(raw, emb, mask)

    for dtype, tol in ((jnp.float32, 2e-2), (jnp.bfloat16, 5e-2)):
        fwd = jax.jit(functools.partial(question_encoding_forward, fused, panel_dtype=dtype))
        out = jax.block_until_ready(fwd(emb, lengths, mask))
        assert out.shape == (B, L * H * 2), out.shape
        np.testing.assert_allclose(np.asarray(out), np.asarray(ref), rtol=tol, atol=tol)

    # Case 3: tile-aligned shapes exercising the batch-parallel axis (B split into 2 blocks)
    # and the T-chunked recurrence with scratch-carried state (time_chunk=8 -> 2 chunks).
    B, T, D, H, L = 16, 16, 64, 128, 2
    k_emb, k_len, k_param = jax.random.split(jax.random.fold_in(jax.random.PRNGKey(0), 1), 3)
    emb = jax.random.normal(k_emb, (B, T, D), jnp.float32)
    lengths = jax.random.randint(k_len, (B,), 1, T + 1).astype(jnp.int32)
    mask = (jnp.arange(T)[None, :] < lengths[:, None]).astype(jnp.int32)
    raw = init_params(k_param, D, H, L)
    fused = fuse_params(raw, H)
    fwd = jax.jit(functools.partial(question_encoding_forward, fused,
                                    panel_dtype=jnp.float32, time_chunk=8))
    out = jax.block_until_ready(fwd(emb, lengths, mask))
    assert out.shape == (B, L * H * 2), out.shape
    ref = reference_forward(raw, emb, mask)
    np.testing.assert_allclose(np.asarray(out), np.asarray(ref), rtol=3e-2, atol=3e-2)

    print("KERNEL_OK")
</pallas_src>

<mosaic_0001>
module attributes {stable_mosaic.version = 11 : i64} {
  func.func @_attn_weights_kernel(%arg0: i32, %arg1: memref<2x8x32xf32, #tpu.memory_space<vmem>>, %arg2: memref<2x8xi32, #tpu.memory_space<vmem>>, %arg3: memref<1x32xf32, #tpu.memory_space<vmem>>, %arg4: memref<2x8xf32, #tpu.memory_space<vmem>>) attributes {dimension_semantics = [#tpu.dimension_semantics<parallel>], iteration_bounds = array<i64: 1>, scalar_prefetch = 0 : i64, scratch_operands = 0 : i64, tpu.core_type = #tpu.core_type<tc>, window_params = [{transform_indices = @transform_0, window_bounds = array<i64: 2, 8, 32>}, {transform_indices = @transform_1, window_bounds = array<i64: 2, 8>}, {pipeline_mode = #tpu.pipeline_mode<synchronous>, transform_indices = @transform_2, window_bounds = array<i64: 1, 32>}, {transform_indices = @transform_3, window_bounds = array<i64: 2, 8>}]} {
    %c0 = arith.constant 0 : index
    %c0_0 = arith.constant 0 : index
    %c0_1 = arith.constant 0 : index
    %0 = vector.load %arg1[%c0, %c0_0, %c0_1] : memref<2x8x32xf32, #tpu.memory_space<vmem>>, vector<2x8x32xf32>
    %c0_2 = arith.constant 0 : index
    %c0_3 = arith.constant 0 : index
    %1 = vector.load %arg3[%c0_2, %c0_3] : memref<1x32xf32, #tpu.memory_space<vmem>>, vector<1x32xf32>
    %c0_4 = arith.constant 0 : index
    %c0_5 = arith.constant 0 : index
    %2 = vector.load %arg2[%c0_4, %c0_5] : memref<2x8xi32, #tpu.memory_space<vmem>>, vector<2x8xi32>
    %c0_i32 = arith.constant 0 : i32
    %3 = vector.broadcast %c0_i32 : i32 to vector<2x8xi32>
    %4 = arith.cmpi sgt, %2, %3 : vector<2x8xi32>
    %5 = arith.extui %4 : vector<2x8xi1> to vector<2x8xi32>
    %6 = arith.sitofp %5 : vector<2x8xi32> to vector<2x8xf32>
    %7 = vector.shape_cast %1 : vector<1x32xf32> to vector<1x1x32xf32>
    %8 = vector.broadcast %7 : vector<1x1x32xf32> to vector<2x8x32xf32>
    %9 = arith.mulf %0, %8 : vector<2x8x32xf32>
    %cst = arith.constant dense<0.000000e+00> : vector<2x8xf32>
    %10 = vector.multi_reduction <add>, %9, %cst [2] : vector<2x8x32xf32> to vector<2x8xf32>
    %cst_6 = arith.constant 0.000000e+00 : f32
    %11 = vector.broadcast %cst_6 : f32 to vector<2x8xf32>
    %12 = arith.cmpf ogt, %6, %11 : vector<2x8xf32>
    %cst_7 = arith.constant -1.000000e+30 : f32
    %13 = vector.broadcast %cst_7 : f32 to vector<2x8xf32>
    %14 = arith.select %12, %10, %13 : vector<2x8xi1>, vector<2x8xf32>
    %cst_8 = arith.constant dense<0xFF800000> : vector<2xf32>
    %15 = vector.multi_reduction <maximumf>, %14, %cst_8 [1] : vector<2x8xf32> to vector<2xf32>
    %16 = vector.shape_cast %15 : vector<2xf32> to vector<2x1xf32>
    %17 = vector.broadcast %16 : vector<2x1xf32> to vector<2x8xf32>
    %18 = arith.subf %14, %17 : vector<2x8xf32>
    %19 = math.exp %18 : vector<2x8xf32>
    %20 = arith.mulf %19, %6 : vector<2x8xf32>
    %cst_9 = arith.constant dense<0.000000e+00> : vector<2xf32>
    %21 = vector.multi_reduction <add>, %20, %cst_9 [1] : vector<2x8xf32> to vector<2xf32>
    %22 = vector.shape_cast %21 : vector<2xf32> to vector<2x1xf32>
    %cst_10 = arith.constant 1.000000e-30 : f32
    %23 = vector.broadcast %cst_10 : f32 to vector<2x1xf32>
    %24 = arith.maximumf %22, %23 : vector<2x1xf32>
    %25 = vector.broadcast %24 : vector<2x1xf32> to vector<2x8xf32>
    %26 = arith.divf %20, %25 : vector<2x8xf32>
    %c0_11 = arith.constant 0 : index
    %c0_12 = arith.constant 0 : index
    %27 = vector.load %arg4[%c0_11, %c0_12] : memref<2x8xf32, #tpu.memory_space<vmem>>, vector<2x8xf32>
    tpu.vector_store %arg4[%c0_11, %c0_12], %26 {strides = array<i32>} : memref<2x8xf32, #tpu.memory_space<vmem>>, vector<2x8xf32>,
    return
  }
  func.func @transform_0(%arg0: i32) -> (i32, i32, i32) {
    %c0_i32 = arith.constant 0 : i32
    %c0_i32_0 = arith.constant 0 : i32
    %c0_i32_1 = arith.constant 0 : i32
    return %arg0, %c0_i32, %c0_i32_0 : i32, i32, i32
  }
  func.func @transform_1(%arg0: i32) -> (i32, i32) {
    %c0_i32 = arith.constant 0 : i32
    %c0_i32_0 = arith.constant 0 : i32
    return %arg0, %c0_i32 : i32, i32
  }
  func.func @transform_2(%arg0: i32) -> (i32, i32) {
    %c0_i32 = arith.constant 0 : i32
    %c0_i32_0 = arith.constant 0 : i32
    %c0_i32_1 = arith.constant 0 : i32
    return %c0_i32, %c0_i32_0 : i32, i32
  }
  func.func @transform_3(%arg0: i32) -> (i32, i32) {
    %c0_i32 = arith.constant 0 : i32
    %c0_i32_0 = arith.constant 0 : i32
    return %arg0, %c0_i32 : i32, i32
  }
}

module attributes {stable_mosaic.version = 11 : i64} {
  func.func @kernel(%arg0: i32, %arg1: i32, %arg2: memref<2x1xi32, #tpu.memory_space<vmem>>, %arg3: memref<8x2x128xf32, #tpu.memory_space<vmem>>, %arg4: memref<32x128xf32, #tpu.memory_space<vmem>>, %arg5: memref<8x2x2xf32, #tpu.memory_space<vmem>>, %arg6: memref<8x2x32xf32, #tpu.memory_space<vmem>>, %arg7: memref<2x32xf32, #tpu.memory_space<vmem>>, %arg8: memref<2x32xf32, #tpu.memory_space<vmem>>, %arg9: memref<2x32xf32, #tpu.memory_space<vmem>>) attributes {dimension_semantics = [#tpu.dimension_semantics<parallel>, #tpu.dimension_semantics<arbitrary>], iteration_bounds = array<i64: 1, 1>, scalar_prefetch = 0 : i64, scratch_operands = 2 : i64, tpu.core_type = #tpu.core_type<tc>, window_params = [{transform_indices = @transform_0, window_bounds = array<i64: 2, 1>}, {transform_indices = @transform_1, window_bounds = array<i64: 8, 2, 128>}, {pipeline_mode = #tpu.pipeline_mode<synchronous>, transform_indices = @transform_2, window_bounds = array<i64: 32, 128>}, {transform_indices = @transform_3, window_bounds = array<i64: 8, 2, 2>}, {transform_indices = @transform_4, window_bounds = array<i64: 8, 2, 32>}, {transform_indices = @transform_5, window_bounds = array<i64: 2, 32>}]} {
    %c0_i32 = arith.constant 0 : i32
    %0 = arith.cmpi eq, %arg1, %c0_i32 : i32
    %1 = arith.extui %0 : i1 to i32
    %c0_i32_0 = arith.constant 0 : i32
    %2 = arith.cmpi ne, %1, %c0_i32_0 : i32
    scf.if %2 {
      %cst_19 = arith.constant 0.000000e+00 : f32
      %19 = vector.broadcast %cst_19 : f32 to vector<2x32xf32>
      %c0_20 = arith.constant 0 : index
      %c0_21 = arith.constant 0 : index
      %20 = vector.load %arg8[%c0_20, %c0_21] : memref<2x32xf32, #tpu.memory_space<vmem>>, vector<2x32xf32>
      tpu.vector_store %arg8[%c0_20, %c0_21], %19 {strides = array<i32>} : memref<2x32xf32, #tpu.memory_space<vmem>>, vector<2x32xf32>,
      %cst_22 = arith.constant 0.000000e+00 : f32
      %21 = vector.broadcast %cst_22 : f32 to vector<2x32xf32>
      %c0_23 = arith.constant 0 : index
      %c0_24 = arith.constant 0 : index
      %22 = vector.load %arg9[%c0_23, %c0_24] : memref<2x32xf32, #tpu.memory_space<vmem>>, vector<2x32xf32>
      tpu.vector_store %arg9[%c0_23, %c0_24], %21 {strides = array<i32>} : memref<2x32xf32, #tpu.memory_space<vmem>>, vector<2x32xf32>,
      %cst_25 = arith.constant 0.000000e+00 : f32
      %23 = vector.broadcast %cst_25 : f32 to vector<2x32xf32>
      %c0_26 = arith.constant 0 : index
      %c0_27 = arith.constant 0 : index
      %24 = vector.load %arg7[%c0_26, %c0_27] : memref<2x32xf32, #tpu.memory_space<vmem>>, vector<2x32xf32>
      tpu.vector_store %arg7[%c0_26, %c0_27], %23 {strides = array<i32>} : memref<2x32xf32, #tpu.memory_space<vmem>>, vector<2x32xf32>,
    } else {
    }
    %c0 = arith.constant 0 : index
    %c0_1 = arith.constant 0 : index
    %3 = vector.load %arg2[%c0, %c0_1] : memref<2x1xi32, #tpu.memory_space<vmem>>, vector<2x1xi32>
    %c0_2 = arith.constant 0 : index
    %c0_3 = arith.constant 0 : index
    %4 = vector.load %arg4[%c0_2, %c0_3] : memref<32x128xf32, #tpu.memory_space<vmem>>, vector<32x128xf32>
    %5 = tpu.iota {dimensions = array<i32: 1>} : vector<1x32xi32>
    %c16_i32 = arith.constant 16 : i32
    %6 = vector.broadcast %c16_i32 : i32 to vector<1x32xi32>
    %7 = arith.cmpi slt, %5, %6 : vector<1x32xi32>
    %c8_i32 = arith.constant 8 : i32
    %8 = arith.muli %arg1, %c8_i32 : i32
    %c0_4 = arith.constant 0 : index
    %c0_5 = arith.constant 0 : index
    %9 = vector.load %arg8[%c0_4, %c0_5] : memref<2x32xf32, #tpu.memory_space<vmem>>, vector<2x32xf32>
    %c0_6 = arith.constant 0 : index
    %c0_7 = arith.constant 0 : index
    %10 = vector.load %arg9[%c0_6, %c0_7] : memref<2x32xf32, #tpu.memory_space<vmem>>, vector<2x32xf32>
    %cst = arith.constant 0.000000e+00 : f32
    %11 = vector.broadcast %cst : f32 to vector<2x32xf32>
    %c0_i32_8 = arith.constant 0 : i32
    %c8_i32_9 = arith.constant 8 : i32
    %12 = arith.addi %c0_i32_8, %c8_i32_9 : i32
    %c1_i32 = arith.constant 1 : i32
    %13:3 = scf.for %arg10 = %c0_i32_8 to %12 step %c1_i32 iter_args(%arg11 = %9, %arg12 = %10, %arg13 = %11) -> (vector<2x32xf32>, vector<2x32xf32>, vector<2x32xf32>)  : i32 {
      %19 = arith.addi %8, %arg10 : i32
      %c7_i32 = arith.constant 7 : i32
      %20 = arith.subi %c7_i32, %19 : i32
      %21 = arith.index_cast %arg10 : i32 to index
      %c0_19 = arith.constant 0 : index
      %c0_20 = arith.constant 0 : index
      %22 = vector.load %arg3[%21, %c0_19, %c0_20] : memref<8x2x128xf32, #tpu.memory_space<vmem>>, vector<1x2x128xf32>
      %23 = vector.shape_cast %22 : vector<1x2x128xf32> to vector<2x128xf32>
      %cst_21 = arith.constant dense<0.000000e+00> : vector<2x128xf32>
      %24 = tpu.matmul %arg11, %4, %cst_21 {dimension_numbers = #tpu.dot_dimension_numbers<[1], [0], [0], [1], [0, 0, 1, 1], [], []>} : vector<2x32xf32>, vector<32x128xf32>, vector<2x128xf32> -> vector<2x128xf32>
      %25 = arith.addf %23, %24 : vector<2x128xf32>
      %26 = vector.extract_strided_slice %25 {offsets = [0, 0], sizes = [2, 96], strides = [1, 1]} : vector<2x128xf32> to vector<2x96xf32>
      %27 = arith.negf %26 : vector<2x96xf32>
      %28 = math.exp %27 : vector<2x96xf32>
      %cst_22 = arith.constant 1.000000e+00 : f32
      %29 = vector.broadcast %cst_22 : f32 to vector<2x96xf32>
      %30 = arith.addf %29, %28 : vector<2x96xf32>
      %31 = arith.divf %29, %30 : vector<2x96xf32>
      %32 = vector.extract_strided_slice %31 {offsets = [0, 0], sizes = [2, 32], strides = [1, 1]} : vector<2x96xf32> to vector<2x32xf32>
      %33 = vector.extract_strided_slice %31 {offsets = [0, 32], sizes = [2, 32], strides = [1, 1]} : vector<2x96xf32> to vector<2x32xf32>
      %34 = vector.extract_strided_slice %31 {offsets = [0, 64], sizes = [2, 32], strides = [1, 1]} : vector<2x96xf32> to vector<2x32xf32>
      %35 = vector.extract_strided_slice %25 {offsets = [0, 96], sizes = [2, 32], strides = [1, 1]} : vector<2x128xf32> to vector<2x32xf32>
      %36 = math.tanh %35 : vector<2x32xf32>
      %37 = arith.mulf %33, %arg12 : vector<2x32xf32>
      %38 = arith.mulf %32, %36 : vector<2x32xf32>
      %39 = arith.addf %37, %38 : vector<2x32xf32>
      %40 = math.tanh %39 : vector<2x32xf32>
      %41 = arith.mulf %34, %40 : vector<2x32xf32>
      %42 = vector.broadcast %19 : i32 to vector<1x32xi32>
      %43 = vector.broadcast %20 : i32 to vector<1x32xi32>
      %44 = arith.select %7, %42, %43 : vector<1x32xi1>, vector<1x32xi32>
      %45 = vector.broadcast %44 : vector<1x32xi32> to vector<2x32xi32>
      %46 = vector.broadcast %3 : vector<2x1xi32> to vector<2x32xi32>
      %47 = arith.cmpi slt, %45, %46 : vector<2x32xi32>
      %48 = arith.extui %47 : vector<2x32xi1> to vector<2x32xi32>
      %49 = arith.sitofp %48 : vector<2x32xi32> to vector<2x32xf32>
      %50 = arith.mulf %49, %41 : vector<2x32xf32>
      %cst_23 = arith.constant 1.000000e+00 : f32
      %51 = vector.broadcast %cst_23 : f32 to vector<2x32xf32>
      %52 = arith.subf %51, %49 : vector<2x32xf32>
      %53 = arith.mulf %52, %arg11 : vector<2x32xf32>
      %54 = arith.addf %50, %53 : vector<2x32xf32>
      %55 = arith.mulf %49, %39 : vector<2x32xf32>
      %cst_24 = arith.constant 1.000000e+00 : f32
      %56 = vector.broadcast %cst_24 : f32 to vector<2x32xf32>
      %57 = arith.subf %56, %49 : vector<2x32xf32>
      %58 = arith.mulf %57, %arg12 : vector<2x32xf32>
      %59 = arith.addf %55, %58 : vector<2x32xf32>
      %60 = arith.mulf %49, %41 : vector<2x32xf32>
      %61 = arith.index_cast %arg10 : i32 to index
      %c0_25 = arith.constant 0 : index
      %c0_26 = arith.constant 0 : index
      %62 = vector.load %arg6[%61, %c0_25, %c0_26] : memref<8x2x32xf32, #tpu.memory_space<vmem>>, vector<1x2x32xf32>
      %63 = vector.shape_cast %62 : vector<1x2x32xf32> to vector<2x32xf32>
      %64 = vector.shape_cast %60 : vector<2x32xf32> to vector<1x2x32xf32>
      tpu.vector_store %arg6[%61, %c0_25, %c0_26], %64 {strides = array<i32>} : memref<8x2x32xf32, #tpu.memory_space<vmem>>, vector<1x2x32xf32>,
      %65 = arith.index_cast %arg10 : i32 to index
      %c0_27 = arith.constant 0 : index
      %c0_28 = arith.constant 0 : index
      %66 = vector.load %arg5[%65, %c0_27, %c0_28] : memref<8x2x2xf32, #tpu.memory_space<vmem>>, vector<1x2x2xf32>
      %67 = vector.shape_cast %66 : vector<1x2x2xf32> to vector<2x2xf32>
      %68 = vector.extract_strided_slice %67 {offsets = [0, 0], sizes = [2, 1], strides = [1, 1]} : vector<2x2xf32> to vector<2x1xf32>
      %69 = vector.extract_strided_slice %67 {offsets = [0, 1], sizes = [2, 1], strides = [1, 1]} : vector<2x2xf32> to vector<2x1xf32>
      %70 = vector.shape_cast %7 : vector<1x32xi1> to vector<1x32xi1>
      %71 = vector.broadcast %70 : vector<1x32xi1> to vector<2x32xi1>
      %72 = vector.shape_cast %68 : vector<2x1xf32> to vector<2x1xf32>
      %73 = vector.broadcast %72 : vector<2x1xf32> to vector<2x32xf32>
      %74 = vector.shape_cast %69 : vector<2x1xf32> to vector<2x1xf32>
      %75 = vector.broadcast %74 : vector<2x1xf32> to vector<2x32xf32>
      %76 = arith.select %71, %73, %75 : vector<2x32xi1>, vector<2x32xf32>
      %77 = arith.mulf %76, %60 : vector<2x32xf32>
      %78 = arith.addf %arg13, %77 : vector<2x32xf32>
      scf.yield %54, %59, %78 : vector<2x32xf32>, vector<2x32xf32>, vector<2x32xf32>
    }
    %c8_i32_10 = arith.constant 8 : i32
    %c0_11 = arith.constant 0 : index
    %c0_12 = arith.constant 0 : index
    %14 = vector.load %arg8[%c0_11, %c0_12] : memref<2x32xf32, #tpu.memory_space<vmem>>, vector<2x32xf32>
    tpu.vector_store %arg8[%c0_11, %c0_12], %13#0 {strides = array<i32>} : memref<2x32xf32, #tpu.memory_space<vmem>>, vector<2x32xf32>,
    %c0_13 = arith.constant 0 : index
    %c0_14 = arith.constant 0 : index
    %15 = vector.load %arg9[%c0_13, %c0_14] : memref<2x32xf32, #tpu.memory_space<vmem>>, vector<2x32xf32>
    tpu.vector_store %arg9[%c0_13, %c0_14], %13#1 {strides = array<i32>} : memref<2x32xf32, #tpu.memory_space<vmem>>, vector<2x32xf32>,
    %c0_15 = arith.constant 0 : index
    %c0_16 = arith.constant 0 : index
    %16 = vector.load %arg7[%c0_15, %c0_16] : memref<2x32xf32, #tpu.memory_space<vmem>>, vector<2x32xf32>
    %17 = arith.addf %16, %13#2 : vector<2x32xf32>
    %c0_17 = arith.constant 0 : index
    %c0_18 = arith.constant 0 : index
    %18 = vector.load %arg7[%c0_17, %c0_18] : memref<2x32xf32, #tpu.memory_space<vmem>>, vector<2x32xf32>
    tpu.vector_store %arg7[%c0_17, %c0_18], %17 {strides = array<i32>} : memref<2x32xf32, #tpu.memory_space<vmem>>, vector<2x32xf32>,
    return
  }
  func.func @transform_0(%arg0: i32, %arg1: i32) -> (i32, i32) {
    %c0_i32 = arith.constant 0 : i32
    %c0_i32_0 = arith.constant 0 : i32
    return %arg0, %c0_i32 : i32, i32
  }
  func.func @transform_1(%arg0: i32, %arg1: i32) -> (i32, i32, i32) {
    %c0_i32 = arith.constant 0 : i32
    %c0_i32_0 = arith.constant 0 : i32
    return %arg1, %arg0, %c0_i32 : i32, i32, i32
  }
  func.func @transform_2(%arg0: i32, %arg1: i32) -> (i32, i32) {
    %c0_i32 = arith.constant 0 : i32
    %c0_i32_0 = arith.constant 0 : i32
    %c0_i32_1 = arith.constant 0 : i32
    return %c0_i32, %c0_i32_0 : i32, i32
  }
  func.func @transform_3(%arg0: i32, %arg1: i32) -> (i32, i32, i32) {
    %c0_i32 = arith.constant 0 : i32
    %c0_i32_0 = arith.constant 0 : i32
    return %arg1, %arg0, %c0_i32 : i32, i32, i32
  }
  func.func @transform_4(%arg0: i32, %arg1: i32) -> (i32, i32, i32) {
    %c0_i32 = arith.constant 0 : i32
    %c0_i32_0 = arith.constant 0 : i32
    return %arg1, %arg0, %c0_i32 : i32, i32, i32
  }
  func.func @transform_5(%arg0: i32, %arg1: i32) -> (i32, i32) {
    %c0_i32 = arith.constant 0 : i32
    %c0_i32_0 = arith.constant 0 : i32
    return %arg0, %c0_i32 : i32, i32
  }
}

module attributes {stable_mosaic.version = 11 : i64} {
  func.func @kernel(%arg0: i32, %arg1: i32, %arg2: memref<2x1xi32, #tpu.memory_space<vmem>>, %arg3: memref<8x2x128xf32, #tpu.memory_space<vmem>>, %arg4: memref<32x128xf32, #tpu.memory_space<vmem>>, %arg5: memref<8x2x2xf32, #tpu.memory_space<vmem>>, %arg6: memref<8x2x32xf32, #tpu.memory_space<vmem>>, %arg7: memref<2x32xf32, #tpu.memory_space<vmem>>, %arg8: memref<2x32xf32, #tpu.memory_space<vmem>>, %arg9: memref<2x32xf32, #tpu.memory_space<vmem>>) attributes {dimension_semantics = [#tpu.dimension_semantics<parallel>, #tpu.dimension_semantics<arbitrary>], iteration_bounds = array<i64: 1, 1>, scalar_prefetch = 0 : i64, scratch_operands = 2 : i64, tpu.core_type = #tpu.core_type<tc>, window_params = [{transform_indices = @transform_0, window_bounds = array<i64: 2, 1>}, {transform_indices = @transform_1, window_bounds = array<i64: 8, 2, 128>}, {pipeline_mode = #tpu.pipeline_mode<synchronous>, transform_indices = @transform_2, window_bounds = array<i64: 32, 128>}, {transform_indices = @transform_3, window_bounds = array<i64: 8, 2, 2>}, {transform_indices = @transform_4, window_bounds = array<i64: 8, 2, 32>}, {transform_indices = @transform_5, window_bounds = array<i64: 2, 32>}]} {
    %c0_i32 = arith.constant 0 : i32
    %0 = arith.cmpi eq, %arg1, %c0_i32 : i32
    %1 = arith.extui %0 : i1 to i32
    %c0_i32_0 = arith.constant 0 : i32
    %2 = arith.cmpi ne, %1, %c0_i32_0 : i32
    scf.if %2 {
      %cst_19 = arith.constant 0.000000e+00 : f32
      %19 = vector.broadcast %cst_19 : f32 to vector<2x32xf32>
      %c0_20 = arith.constant 0 : index
      %c0_21 = arith.constant 0 : index
      %20 = vector.load %arg8[%c0_20, %c0_21] : memref<2x32xf32, #tpu.memory_space<vmem>>, vector<2x32xf32>
      tpu.vector_store %arg8[%c0_20, %c0_21], %19 {strides = array<i32>} : memref<2x32xf32, #tpu.memory_space<vmem>>, vector<2x32xf32>,
      %cst_22 = arith.constant 0.000000e+00 : f32
      %21 = vector.broadcast %cst_22 : f32 to vector<2x32xf32>
      %c0_23 = arith.constant 0 : index
      %c0_24 = arith.constant 0 : index
      %22 = vector.load %arg9[%c0_23, %c0_24] : memref<2x32xf32, #tpu.memory_space<vmem>>, vector<2x32xf32>
      tpu.vector_store %arg9[%c0_23, %c0_24], %21 {strides = array<i32>} : memref<2x32xf32, #tpu.memory_space<vmem>>, vector<2x32xf32>,
      %cst_25 = arith.constant 0.000000e+00 : f32
      %23 = vector.broadcast %cst_25 : f32 to vector<2x32xf32>
      %c0_26 = arith.constant 0 : index
      %c0_27 = arith.constant 0 : index
      %24 = vector.load %arg7[%c0_26, %c0_27] : memref<2x32xf32, #tpu.memory_space<vmem>>, vector<2x32xf32>
      tpu.vector_store %arg7[%c0_26, %c0_27], %23 {strides = array<i32>} : memref<2x32xf32, #tpu.memory_space<vmem>>, vector<2x32xf32>,
    } else {
    }
    %c0 = arith.constant 0 : index
    %c0_1 = arith.constant 0 : index
    %3 = vector.load %arg2[%c0, %c0_1] : memref<2x1xi32, #tpu.memory_space<vmem>>, vector<2x1xi32>
    %c0_2 = arith.constant 0 : index
    %c0_3 = arith.constant 0 : index
    %4 = vector.load %arg4[%c0_2, %c0_3] : memref<32x128xf32, #tpu.memory_space<vmem>>, vector<32x128xf32>
    %5 = tpu.iota {dimensions = array<i32: 1>} : vector<1x32xi32>
    %c16_i32 = arith.constant 16 : i32
    %6 = vector.broadcast %c16_i32 : i32 to vector<1x32xi32>
    %7 = arith.cmpi slt, %5, %6 : vector<1x32xi32>
    %c8_i32 = arith.constant 8 : i32
    %8 = arith.muli %arg1, %c8_i32 : i32
    %c0_4 = arith.constant 0 : index
    %c0_5 = arith.constant 0 : index
    %9 = vector.load %arg8[%c0_4, %c0_5] : memref<2x32xf32, #tpu.memory_space<vmem>>, vector<2x32xf32>
    %c0_6 = arith.constant 0 : index
    %c0_7 = arith.constant 0 : index
    %10 = vector.load %arg9[%c0_6, %c0_7] : memref<2x32xf32, #tpu.memory_space<vmem>>, vector<2x32xf32>
    %cst = arith.constant 0.000000e+00 : f32
    %11 = vector.broadcast %cst : f32 to vector<2x32xf32>
    %c0_i32_8 = arith.constant 0 : i32
    %c8_i32_9 = arith.constant 8 : i32
    %12 = arith.addi %c0_i32_8, %c8_i32_9 : i32
    %c1_i32 = arith.constant 1 : i32
    %13:3 = scf.for %arg10 = %c0_i32_8 to %12 step %c1_i32 iter_args(%arg11 = %9, %arg12 = %10, %arg13 = %11) -> (vector<2x32xf32>, vector<2x32xf32>, vector<2x32xf32>)  : i32 {
      %19 = arith.addi %8, %arg10 : i32
      %c7_i32 = arith.constant 7 : i32
      %20 = arith.subi %c7_i32, %19 : i32
      %21 = arith.index_cast %arg10 : i32 to index
      %c0_19 = arith.constant 0 : index
      %c0_20 = arith.constant 0 : index
      %22 = vector.load %arg3[%21, %c0_19, %c0_20] : memref<8x2x128xf32, #tpu.memory_space<vmem>>, vector<1x2x128xf32>
      %23 = vector.shape_cast %22 : vector<1x2x128xf32> to vector<2x128xf32>
      %cst_21 = arith.constant dense<0.000000e+00> : vector<2x128xf32>
      %24 = tpu.matmul %arg11, %4, %cst_21 {dimension_numbers = #tpu.dot_dimension_numbers<[1], [0], [0], [1], [0, 0, 1, 1], [], []>} : vector<2x32xf32>, vector<32x128xf32>, vector<2x128xf32> -> vector<2x128xf32>
      %25 = arith.addf %23, %24 : vector<2x128xf32>
      %26 = vector.extract_strided_slice %25 {offsets = [0, 0], sizes = [2, 96], strides = [1, 1]} : vector<2x128xf32> to vector<2x96xf32>
      %27 = arith.negf %26 : vector<2x96xf32>
      %28 = math.exp %27 : vector<2x96xf32>
      %cst_22 = arith.constant 1.000000e+00 : f32
      %29 = vector.broadcast %cst_22 : f32 to vector<2x96xf32>
      %30 = arith.addf %29, %28 : vector<2x96xf32>
      %31 = arith.divf %29, %30 : vector<2x96xf32>
      %32 = vector.extract_strided_slice %31 {offsets = [0, 0], sizes = [2, 32], strides = [1, 1]} : vector<2x96xf32> to vector<2x32xf32>
      %33 = vector.extract_strided_slice %31 {offsets = [0, 32], sizes = [2, 32], strides = [1, 1]} : vector<2x96xf32> to vector<2x32xf32>
      %34 = vector.extract_strided_slice %31 {offsets = [0, 64], sizes = [2, 32], strides = [1, 1]} : vector<2x96xf32> to vector<2x32xf32>
      %35 = vector.extract_strided_slice %25 {offsets = [0, 96], sizes = [2, 32], strides = [1, 1]} : vector<2x128xf32> to vector<2x32xf32>
      %36 = math.tanh %35 : vector<2x32xf32>
      %37 = arith.mulf %33, %arg12 : vector<2x32xf32>
      %38 = arith.mulf %32, %36 : vector<2x32xf32>
      %39 = arith.addf %37, %38 : vector<2x32xf32>
      %40 = math.tanh %39 : vector<2x32xf32>
      %41 = arith.mulf %34, %40 : vector<2x32xf32>
      %42 = vector.broadcast %19 : i32 to vector<1x32xi32>
      %43 = vector.broadcast %20 : i32 to vector<1x32xi32>
      %44 = arith.select %7, %42, %43 : vector<1x32xi1>, vector<1x32xi32>
      %45 = vector.broadcast %44 : vector<1x32xi32> to vector<2x32xi32>
      %46 = vector.broadcast %3 : vector<2x1xi32> to vector<2x32xi32>
      %47 = arith.cmpi slt, %45, %46 : vector<2x32xi32>
      %48 = arith.extui %47 : vector<2x32xi1> to vector<2x32xi32>
      %49 = arith.sitofp %48 : vector<2x32xi32> to vector<2x32xf32>
      %50 = arith.mulf %49, %41 : vector<2x32xf32>
      %cst_23 = arith.constant 1.000000e+00 : f32
      %51 = vector.broadcast %cst_23 : f32 to vector<2x32xf32>
      %52 = arith.subf %51, %49 : vector<2x32xf32>
      %53 = arith.mulf %52, %arg11 : vector<2x32xf32>
      %54 = arith.addf %50, %53 : vector<2x32xf32>
      %55 = arith.mulf %49, %39 : vector<2x32xf32>
      %cst_24 = arith.constant 1.000000e+00 : f32
      %56 = vector.broadcast %cst_24 : f32 to vector<2x32xf32>
      %57 = arith.subf %56, %49 : vector<2x32xf32>
      %58 = arith.mulf %57, %arg12 : vector<2x32xf32>
      %59 = arith.addf %55, %58 : vector<2x32xf32>
      %60 = arith.mulf %49, %41 : vector<2x32xf32>
      %61 = arith.index_cast %arg10 : i32 to index
      %c0_25 = arith.constant 0 : index
      %c0_26 = arith.constant 0 : index
      %62 = vector.load %arg6[%61, %c0_25, %c0_26] : memref<8x2x32xf32, #tpu.memory_space<vmem>>, vector<1x2x32xf32>
      %63 = vector.shape_cast %62 : vector<1x2x32xf32> to vector<2x32xf32>
      %64 = vector.shape_cast %60 : vector<2x32xf32> to vector<1x2x32xf32>
      tpu.vector_store %arg6[%61, %c0_25, %c0_26], %64 {strides = array<i32>} : memref<8x2x32xf32, #tpu.memory_space<vmem>>, vector<1x2x32xf32>,
      %65 = arith.index_cast %arg10 : i32 to index
      %c0_27 = arith.constant 0 : index
      %c0_28 = arith.constant 0 : index
      %66 = vector.load %arg5[%65, %c0_27, %c0_28] : memref<8x2x2xf32, #tpu.memory_space<vmem>>, vector<1x2x2xf32>
      %67 = vector.shape_cast %66 : vector<1x2x2xf32> to vector<2x2xf32>
      %68 = vector.extract_strided_slice %67 {offsets = [0, 0], sizes = [2, 1], strides = [1, 1]} : vector<2x2xf32> to vector<2x1xf32>
      %69 = vector.extract_strided_slice %67 {offsets = [0, 1], sizes = [2, 1], strides = [1, 1]} : vector<2x2xf32> to vector<2x1xf32>
      %70 = vector.shape_cast %7 : vector<1x32xi1> to vector<1x32xi1>
      %71 = vector.broadcast %70 : vector<1x32xi1> to vector<2x32xi1>
      %72 = vector.shape_cast %68 : vector<2x1xf32> to vector<2x1xf32>
      %73 = vector.broadcast %72 : vector<2x1xf32> to vector<2x32xf32>
      %74 = vector.shape_cast %69 : vector<2x1xf32> to vector<2x1xf32>
      %75 = vector.broadcast %74 : vector<2x1xf32> to vector<2x32xf32>
      %76 = arith.select %71, %73, %75 : vector<2x32xi1>, vector<2x32xf32>
      %77 = arith.mulf %76, %60 : vector<2x32xf32>
      %78 = arith.addf %arg13, %77 : vector<2x32xf32>
      scf.yield %54, %59, %78 : vector<2x32xf32>, vector<2x32xf32>, vector<2x32xf32>
    }
    %c8_i32_10 = arith.constant 8 : i32
    %c0_11 = arith.constant 0 : index
    %c0_12 = arith.constant 0 : index
    %14 = vector.load %arg8[%c0_11, %c0_12] : memref<2x32xf32, #tpu.memory_space<vmem>>, vector<2x32xf32>
    tpu.vector_store %arg8[%c0_11, %c0_12], %13#0 {strides = array<i32>} : memref<2x32xf32, #tpu.memory_space<vmem>>, vector<2x32xf32>,
    %c0_13 = arith.constant 0 : index
    %c0_14 = arith.constant 0 : index
    %15 = vector.load %arg9[%c0_13, %c0_14] : memref<2x32xf32, #tpu.memory_space<vmem>>, vector<2x32xf32>
    tpu.vector_store %arg9[%c0_13, %c0_14], %13#1 {strides = array<i32>} : memref<2x32xf32, #tpu.memory_space<vmem>>, vector<2x32xf32>,
    %c0_15 = arith.constant 0 : index
    %c0_16 = arith.constant 0 : index
    %16 = vector.load %arg7[%c0_15, %c0_16] : memref<2x32xf32, #tpu.memory_space<vmem>>, vector<2x32xf32>
    %17 = arith.addf %16, %13#2 : vector<2x32xf32>
    %c0_17 = arith.constant 0 : index
    %c0_18 = arith.constant 0 : index
    %18 = vector.load %arg7[%c0_17, %c0_18] : memref<2x32xf32, #tpu.memory_space<vmem>>, vector<2x32xf32>
    tpu.vector_store %arg7[%c0_17, %c0_18], %17 {strides = array<i32>} : memref<2x32xf32, #tpu.memory_space<vmem>>, vector<2x32xf32>,
    return
  }
  func.func @transform_0(%arg0: i32, %arg1: i32) -> (i32, i32) {
    %c0_i32 = arith.constant 0 : i32
    %c0_i32_0 = arith.constant 0 : i32
    return %arg0, %c0_i32 : i32, i32
  }
  func.func @transform_1(%arg0: i32, %arg1: i32) -> (i32, i32, i32) {
    %c0_i32 = arith.constant 0 : i32
    %c0_i32_0 = arith.constant 0 : i32
    return %arg1, %arg0, %c0_i32 : i32, i32, i32
  }
  func.func @transform_2(%arg0: i32, %arg1: i32) -> (i32, i32) {
    %c0_i32 = arith.constant 0 : i32
    %c0_i32_0 = arith.constant 0 : i32
    %c0_i32_1 = arith.constant 0 : i32
    return %c0_i32, %c0_i32_0 : i32, i32
  }
  func.func @transform_3(%arg0: i32, %arg1: i32) -> (i32, i32, i32) {
    %c0_i32 = arith.constant 0 : i32
    %c0_i32_0 = arith.constant 0 : i32
    return %arg1, %arg0, %c0_i32 : i32, i32, i32
  }
  func.func @transform_4(%arg0: i32, %arg1: i32) -> (i32, i32, i32) {
    %c0_i32 = arith.constant 0 : i32
    %c0_i32_0 = arith.constant 0 : i32
    return %arg1, %arg0, %c0_i32 : i32, i32, i32
  }
  func.func @transform_5(%arg0: i32, %arg1: i32) -> (i32, i32) {
    %c0_i32 = arith.constant 0 : i32
    %c0_i32_0 = arith.constant 0 : i32
    return %arg0, %c0_i32 : i32, i32
  }
}

</mosaic_0001>

<bundles_post_ra>
// kernel: question_encoding_forward.3
= control target key start
LH: loop header
LB: loop body
LE: loop exit
PB: predicated region body
PF: predicated region fallthrough
CT: control target
= control target key end

     0   :  { %8 = vsyncpa [#allocation3], 0  ;;  %s119_s12 = smov [#allocation2]   ;;  %s158_s0 = inlined_call_operand.hbm [shape: f32[2,8,32], index: 0, kind: input, shape index: {}]   ;;  %s159_s1 = inlined_call_operand.vmem [shape: s32[2,8], index: 1, kind: input, shape index: {}]   ;;  %s160_s2 = inlined_call_operand.vmem [shape: f32[1,32], index: 2, kind: input, shape index: {}]   ;;  %s161_s3 = inlined_call_operand.vmem [shape: f32[2,8], index: 3, kind: output, shape index: {}]  }
   0x1   :  { %s14_s13 = sshll.u32 %s119_s12, 4  ;;  %s15_s13 = int_to_ptr.vmem [resolvable:$true] %s14_s13 }
   0x2   :  { %s105_s14 = scalar_lea.vmem %s15_s13, 256  ;;  %p110_p1 = scmp.lt.s32.totalorder %s15_s13, %s15_s13 }
   0x3   :  { %p106_p0 = scmp.ne.s32.totalorder %s15_s13, %s105_s14  ;;  %p111_p2 = scmp.lt.s32.totalorder %s105_s14, %s105_s14 }
   0x5   :  { %p112_p3 = por %p111_p2, %p110_p1 }
   0x7   :  { %p113_p4 = pnand %p112_p3, %p106_p0 }
   0x9   :  { %116 = shalt.err (!%p113_p4)
}
   0xa   :  { %s120_s15 = smov 128   ;;  %s121_s16 = smov 8  }
   0xb   :  { %20 = dma.hbm_to_vmem [thread:$0]  %s158_s0, 256, %s15_s13, [#allocation3], %s120_s15, %s120_s15, %s121_s16  }
   0xc   :  { %117 = dma.done.wait [#allocation3], 256  }
   0xd   :  { %118 = vsyncadd [#allocation3], 4294967040  ;;  %v28_v0 = vld [vmem:[#allocation2] sm:$0xff]  ;;  %vm43_vm0 = vcmask 261120   ;;  %v29_v2 = vld [vmem:[#allocation2 + $0x8] sm:$0xff]  ;;  %v53_v7 = vlaneseq  ;;  %v122_v13 = vmov 0.0  }
   0xe   :  { %v88_v1 = vld [vmem:[%s160_s2] ss:$0 sm:$0xff]  ;;  %vm63_vm2 = vcmask 1041409   ;;  %vm67_vm4 = vcmask 58368  }
   0xf   :  { %v41_v3 = vmul.f32 %v88_v1, %v28_v0  ;;  %v42_v4 = vmul.f32 %v88_v1, %v29_v2  ;;  %v31_v8 = vld [vmem:[%s159_s1] sm:$0x3]  ;;  %v54_v9 = vand.u32 127, %v53_v7  ;;  %v56_v10 = vshrl.u32 %v53_v7, 7 }
  0x10   :  { %vm32_vm1 = vcmp.gt.s32.totalorder %v31_v8, 0 }
  0x11   :  { %v44_v5 = vsel %vm43_vm0, %v41_v3, 0.0  ;;  %v47_v6 = vsel %vm43_vm0, %v42_v4, 0.0  ;;  %v57_v12 = vsub.s32 %v54_v9, %v56_v10  ;;  %v87_v14 = vsel %vm32_vm1, 1.0, %v122_v13 }
  0x12   :  { %45 = vadd.xlane.f32.xlu0 %v44_v5  ;;  %vm50_vm3 = vcmp.gt.f32.partialorder %v87_v14, 0.0 }
  0x16   :  { %48 = vadd.xlane.f32.xlu0 %v47_v6 }
  0x9b   :  { %v46_v11 = vpop.xlane.xlu0 %45 }
  0x9c   :  { %v58_v16 = vrot.slane %v46_v11, %v57_v12 }
  0x9f   :  { %v49_v15 = vpop.xlane.xlu0 %48 }
  0xa0   :  { %v62_v17 = vrot.slane %v49_v15, %v57_v12 }
  0xa2   :  { %v64_v18 = vsel %vm63_vm2, %v62_v17, %v58_v16 }
  0xa3   :  { %v66_v19 = vsel %vm50_vm3, %v64_v18, -1e+30 }
  0xa4   :  { %v68_v20 = vsel %vm67_vm4, %v66_v19, -inf }
  0xa5   :  { %69 = vmax.xlane.f32.xlu1 %v68_v20 }
 0x12e   :  { %v70_v21 = vpop.xlane.xlu1 %69 }
 0x12f   :  { %v71_v22 = vsub.f32 %v66_v19, %v70_v21 }
 0x131   :  { %v72_v23 = vmul.f32 1.442695, %v71_v22 }
 0x133   :  { %93 = vpow2.f32 %v72_v23 }
 0x140   :  { %v94_v24 = vpop.eup %93 }
 0x141   :  { %v74_v25 = vmul.f32 %v94_v24, %v87_v14 }
 0x143   :  { %v75_v26 = vsel %vm67_vm4, %v74_v25, 0.0 }
 0x144   :  { %76 = vadd.xlane.f32.xlu1 %v75_v26 }
 0x1cd   :  { %v77_v27 = vpop.xlane.xlu1 %76 }
 0x1ce   :  { %v78_v28 = vmax.f32 %v77_v27, 1e-30 }
 0x1d0   :  { %95 = vrcp.f32 %v78_v28 }
 0x1dd   :  { %v96_v29 = vpop.eup %95 }
 0x1de   :  { %v80_v30 = vmul.f32 %v96_v29, %v74_v25 }
 0x1e0   :  { %81 = vst.msk [vmem:[%s161_s3] sm:$0x3] %vm67_vm4, %v80_v30 }
 0x1e1   :  { %86 = vsyncpa [#allocation3], 1 }

// kernel: question_encoding_forward.4
= control target key start
LH: loop header
LB: loop body
LE: loop exit
PB: predicated region body
PF: predicated region fallthrough
CT: control target
= control target key end

     0   :  { %vm23_vm0 = vcmask 254976   ;;  %v32_v0 = vlaneseq  ;;  %v336_v1 = vmov 0.0   ;;  %v408_v10 = vmov 0.0   ;;  %s414_s29 = smov 0   ;;  %s484_s0 = inlined_call_operand.vmem [shape: s32[2,1], index: 0, kind: input, shape index: {}]   ;;  %s485_s1 = inlined_call_operand.vmem [shape: f32[8,2,128], index: 1, kind: input, shape index: {}]   ;;  %s486_s2 = inlined_call_operand.vmem [shape: f32[32,128], index: 2, kind: input, shape index: {}]   ;;  %s487_s3 = inlined_call_operand.vmem [shape: f32[8,2,2], index: 3, kind: input, shape index: {}]   ;;  %s488_s4 = inlined_call_operand.vmem [shape: f32[8,2,32], index: 4, kind: output, shape index: {0}]   ;;  %s489_s5 = inlined_call_operand.vmem [shape: f32[2,32], index: 5, kind: output, shape index: {1}]  }
   0x1   :  { %24 = vst.msk [vmem:[#allocation2] sm:$0x3] %vm23_vm0, %v336_v1  ;;  %25 = vst.msk [vmem:[#allocation3] sm:$0x3] %vm23_vm0, %v336_v1  ;;  %v379_v2 = vld [vmem:[%s484_s0] sm:$0x3] }
   0x2   :  { %v384_v3 = vld [vmem:[%s486_s2] sm:$0xff]  ;;  %v389_v4 = vld [vmem:[%s486_s2 + $0x8] sm:$0xff]  ;;  %26 = vst.msk [vmem:[%s489_s5] sm:$0x3] %vm23_vm0, %v336_v1  ;;  %v398_v5 = vld [vmem:[%s486_s2 + $0x10] sm:$0xff]  ;;  %v405_v7 = vand.u32 127, %v32_v0 }
   0x3   :  { %v403_v6 = vld [vmem:[%s486_s2 + $0x18] sm:$0xff] }
   0x4   :  { %vm34_vm1 = vcmp.lt.s32.totalorder %v405_v7, 16 }
   0x8   :  { %v36_v8 = vld [vmem:[#allocation2] sm:$0x3]   ;;  %v37_v9 = vld [vmem:[#allocation3] sm:$0x3]  }
   0x9 LB: > { %v337_v11 = vmov 0.0   ;;  %vm338_vm2 = vmmov 0   ;;  %vm52_vm3 = vcmask 261120   ;;  %s439_s2 = sshll.u32 %s334_s29, 1  ;;  %s339_s8 = smov 32   ;;  %v340_v23 = vmov 0   ;;  %s334_s29 = sphi %s414_s29, %s43_s29   ;;  %v330_v8 = vphi %v36_v8, %v492_v8   ;;  %v326_v9 = vphi %v37_v9, %v491_v9   ;;  %v322_v10 = vphi %v408_v10, %v490_v10  }
   0xa   : > { %241 = vmatprep.subr.mxu0 %v337_v11  ;;  %249 = vmatprep.mubr.msk.f32.mxu0 %vm338_vm2, %v337_v11  ;;  %s50_s7 = scalar_lea.vmem %s485_s1, %s439_s2  ;;  %v341_v24 = vmov 1   ;;  %s182_s11 = scalar_lea.vmem %s487_s3, %s439_s2  ;;  %v155_v33 = vstv %s334_s29 }
   0xb   : > { %242 = vmatpush3.msra.mxu0 %v403_v6  ;;  %v51_v12 = vld [vmem:[%s50_s7] sm:$0x3]  ;;  %293 = vset.pattern.permute.xlu1 %v340_v23  ;;  %s342_s12 = smov 96   ;;  %s48_s13 = ssub.s32 7, %s334_s29 }
   0xc   : > { %243 = vmatprep.subr.mxu0 %v337_v11  ;;  %292 = vset.pattern.permute.xlu0 %v340_v23  ;;  %v183_v30 = vld [vmem:[%s182_s11] sm:$0x3]  ;;  %s343_s14 = smov 64   ;;  %v156_v34 = vstv %s48_s13  ;;  %s179_s17 = scalar_lea.vmem %s488_s4, %s439_s2 }
   0xd   : > { %244 = vmatpush3.msra.mxu0 %v398_v5  ;;  %v157_v35 = vsel %vm34_vm1, %v155_v33, %v156_v34  ;;  %s43_s29 = sadd.s32 1, %s334_s29  }
   0xe   : > { %245 = vmatprep.subr.mxu0 %v337_v11  ;;  %p40_p0 = scmp.ge.s32.totalorder %s43_s29, 8  }
   0xf   : > { %246 = vmatpush3.msra.mxu0 %v389_v4  ;;  %v201_v52 = vld [vmem:[%s489_s5] sm:$0x3] (%p40_p0) }
  0x10   : > { %247 = vmatprep.subr.mxu0 %v337_v11 }
  0x11   : > { %248 = vmatpush3.msra.mxu0 %v384_v3 }
  0x12   : > { %250 = vmatmul.mubr.msk.f32.vlgmr.msra.gmra.mxu0 %vm52_vm3, %v330_v8 }
  0xd2   : > { %v122_v13 = vpop.f32.mrf.mxu0 }
  0xd3   : > { %v126_v14 = vadd.f32 %v122_v13, %v51_v12 }
  0xd4   : > { %v251_v15 = vpop.f32.mrf.mxu0 }
  0xd5   : > { %296 = vtanh.f32 %v126_v14  ;;  %v234_v17 = vmul.f32 -1.442695, %v126_v14 }
  0xd7   : > { %298 = vpow2.f32 %v234_v17 }
  0xe2   : > { %v297_v16 = vpop.eup %296 }
  0xe3   : > { %140 = vrot.lane.b32.xlu0 %v297_v16, %s339_s8 }
  0xe4   : > { %v299_v18 = vpop.eup %298 }
  0xe5   : > { %v130_v19 = vadd.f32 1.0, %v299_v18 }
  0xe7   : > { %135 = vrot.lane.b32.xlu0 %v326_v9, %s339_s8  ;;  %300 = vrcp.f32 %v130_v19 }
  0xeb   : > { %159 = vperm.xlu0 %292, %v379_v2  }
  0xef   : > { %295 = vset.pattern.permute.xlu0 %v341_v24 }
  0xf4   : > { %v301_v20 = vpop.eup %300 }
 0x155   : > { %v141_v21 = vpop.permute.xlu0 %140 }
 0x156   : > { %v143_v22 = vmul.f32 %v301_v20, %v141_v21 }
 0x158   : > { %145 = vrot.lane.b32.xlu1 %v143_v22, %s339_s8 }
 0x159   : > { %v136_v25 = vpop.permute.xlu0 %135 }
 0x15a   : > { %v138_v26 = vmul.f32 %v301_v20, %v136_v25 }
 0x166   : > { %v160_v36 = vpop.permute.xlu0 %159 }
 0x167   : > { %vm161_vm4 = vcmp.lt.s32.totalorder %v157_v35, %v160_v36 }
 0x168   : > { %v235_v38 = vsel %vm161_vm4, 1.0, %v337_v11 }
 0x169   : > { %v169_v39 = vsub.f32 1.0, %v235_v38 }
 0x16b   : > { %v177_v41 = vmul.f32 %v326_v9, %v169_v39  ;;  %v170_v45 = vmul.f32 %v330_v8, %v169_v39 }
 0x1ca   : > { %v146_v27 = vpop.permute.xlu1 %145 }
 0x1cb   : > { %v148_v28 = vadd.f32 %v146_v27, %v138_v26 }
 0x1cd   : > { %302 = vtanh.f32 %v148_v28 }
 0x1da   : > { %v303_v29 = vpop.eup %302 }
 0x1db   : > { %151 = vrot.lane.b32.xlu1 %v303_v29, %s339_s8 }
 0x1df   : > { %188 = vperm.xlu1 %293, %v183_v30  }
 0x1e3   : > { %294 = vset.pattern.permute.xlu1 %v341_v24 }
 0x1e4   : > { %192 = vperm.xlu1 %294, %v183_v30  }
 0x1e8   : > { %173 = vrot.lane.b32.xlu1 %v148_v28, %s342_s12 }
 0x24d   : > { %v152_v31 = vpop.permute.xlu1 %151 }
 0x24e   : > { %v154_v32 = vmul.f32 %v301_v20, %v152_v31 }
 0x250   : > { %165 = vrot.lane.b32.xlu0 %v154_v32, %s343_s14 }
 0x25a   : > { %v189_v37 = vpop.permute.xlu1 %188 }
 0x25f   : > { %v193_v40 = vpop.permute.xlu1 %192 }
 0x260   : > { %v195_v48 = vsel %vm34_vm1, %v189_v37, %v193_v40 }
 0x263   : > { %v174_v42 = vpop.permute.xlu1 %173 }
 0x264   : > { %v176_v43 = vmul.f32 %v235_v38, %v174_v42 }
 0x266   : > { %v178_v44 = vadd.f32 %v177_v41, %v176_v43  }
 0x268   : > { %v491_v9 = vmov %v178_v44  ;;  %200 = vst.msk [vmem:[#allocation3] sm:$0x3] (%p40_p0), %vm23_vm0, %v178_v44 }
 0x2c2   : > { %v166_v46 = vpop.permute.xlu0 %165 }
 0x2c3   : > { %v168_v47 = vmul.f32 %v235_v38, %v166_v46 }
 0x2c5   : > { %v171_v49 = vadd.f32 %v170_v45, %v168_v47   ;;  %181 = vst.msk [vmem:[%s179_s17] sm:$0x3] %vm23_vm0, %v168_v47  ;;  %v196_v50 = vmul.f32 %v195_v48, %v168_v47  ;;  %42 = sbr.rel (!%p40_p0) target bundleno = 9 (0x9), region = 58 }
 0x2c7   : > { %v197_v51 = vadd.f32 %v322_v10, %v196_v50   ;;  %v492_v8 = vmov %v171_v49  ;;  %199 = vst.msk [vmem:[#allocation2] sm:$0x3] (%p40_p0), %vm23_vm0, %v171_v49 }
 0x2c9   : > { %v490_v10 = vmov %v197_v51  ;;  %v202_v53 = vadd.f32 (%p40_p0), %v201_v52, %v197_v51 }
 0x2cb   :  { %203 = vst.msk [vmem:[%s489_s5] sm:$0x3] %vm23_vm0, %v202_v53 }

// kernel: question_encoding_forward.5
= control target key start
LH: loop header
LB: loop body
LE: loop exit
PB: predicated region body
PF: predicated region fallthrough
CT: control target
= control target key end

     0   :  { %11 = vsyncpa [#allocation5], 0  ;;  %vm24_vm0 = vcmask 254976   ;;  %v33_v1 = vlaneseq  ;;  %v374_v2 = vmov 0.0   ;;  %v449_v10 = vmov 0.0   ;;  %s455_s29 = smov 0   ;;  %s525_s0 = inlined_call_operand.vmem [shape: s32[2,1], index: 0, kind: input, shape index: {}]   ;;  %s526_s1 = inlined_call_operand.vmem [shape: f32[8,2,128], index: 1, kind: input, shape index: {}]   ;;  %s527_s2 = inlined_call_operand.vmem [shape: f32[32,128], index: 2, kind: input, shape index: {}]   ;;  %s528_s3 = inlined_call_operand.vmem [shape: f32[8,2,2], index: 3, kind: input, shape index: {}]   ;;  %s529_s4 = inlined_call_operand.hbm [shape: f32[8,2,32], index: 4, kind: output, shape index: {0}]   ;;  %s530_s5 = inlined_call_operand.vmem [shape: f32[2,32], index: 5, kind: output, shape index: {1}]  }
   0x1   :  { %v418_v0 = vld [vmem:[%s525_s0] sm:$0x3]  ;;  %25 = vst.msk [vmem:[#allocation2] sm:$0x3] %vm24_vm0, %v374_v2  ;;  %26 = vst.msk [vmem:[#allocation3] sm:$0x3] %vm24_vm0, %v374_v2 }
   0x2   :  { %27 = vst.msk [vmem:[%s530_s5] sm:$0x3] %vm24_vm0, %v374_v2  ;;  %v429_v3 = vld [vmem:[%s527_s2] sm:$0xff]  ;;  %v434_v4 = vld [vmem:[%s527_s2 + $0x8] sm:$0xff]  ;;  %v439_v5 = vld [vmem:[%s527_s2 + $0x10] sm:$0xff]  ;;  %v446_v7 = vand.u32 127, %v33_v1 }
   0x3   :  { %v444_v6 = vld [vmem:[%s527_s2 + $0x18] sm:$0xff] }
   0x4   :  { %vm35_vm1 = vcmp.lt.s32.totalorder %v446_v7, 16 }
   0x8   :  { %v37_v8 = vld [vmem:[#allocation2] sm:$0x3]   ;;  %v38_v9 = vld [vmem:[#allocation3] sm:$0x3]  }
   0x9 LB: > { %v375_v11 = vmov 0.0   ;;  %vm376_vm2 = vmmov 0   ;;  %vm53_vm3 = vcmask 261120   ;;  %s480_s2 = sshll.u32 %s372_s29, 1  ;;  %s377_s8 = smov 32   ;;  %v378_v23 = vmov 0   ;;  %s372_s29 = sphi %s455_s29, %s44_s29   ;;  %v368_v8 = vphi %v37_v8, %v533_v8   ;;  %v364_v9 = vphi %v38_v9, %v532_v9   ;;  %v360_v10 = vphi %v449_v10, %v531_v10  }
   0xa   : > { %254 = vmatprep.subr.mxu0 %v375_v11  ;;  %262 = vmatprep.mubr.msk.f32.mxu0 %vm376_vm2, %v375_v11  ;;  %s51_s7 = scalar_lea.vmem %s526_s1, %s480_s2  ;;  %v379_v24 = vmov 1   ;;  %s183_s11 = scalar_lea.vmem %s528_s3, %s480_s2  ;;  %v156_v33 = vstv %s372_s29 }
   0xb   : > { %255 = vmatpush3.msra.mxu0 %v444_v6  ;;  %v52_v12 = vld [vmem:[%s51_s7] sm:$0x3]  ;;  %309 = vset.pattern.permute.xlu1 %v378_v23  ;;  %s380_s12 = smov 96   ;;  %s49_s13 = ssub.s32 7, %s372_s29 }
   0xc   : > { %256 = vmatprep.subr.mxu0 %v375_v11  ;;  %308 = vset.pattern.permute.xlu0 %v378_v23  ;;  %v184_v30 = vld [vmem:[%s183_s11] sm:$0x3]  ;;  %s381_s14 = smov 64   ;;  %v157_v34 = vstv %s49_s13  ;;  %s180_s15 = scalar_lea.vmem [#allocation4], %s480_s2 }
   0xd   : > { %257 = vmatpush3.msra.mxu0 %v439_v5  ;;  %v158_v35 = vsel %vm35_vm1, %v156_v33, %v157_v34  ;;  %s44_s29 = sadd.s32 1, %s372_s29  }
   0xe   : > { %258 = vmatprep.subr.mxu0 %v375_v11  ;;  %p41_p0 = scmp.ge.s32.totalorder %s44_s29, 8  }
   0xf   : > { %259 = vmatpush3.msra.mxu0 %v434_v4  ;;  %v202_v52 = vld [vmem:[%s530_s5] sm:$0x3] (%p41_p0)  ;;  %s382_s18 = smov (%p41_p0), [#allocation4]  }
  0x10   : > { %260 = vmatprep.subr.mxu0 %v375_v11  ;;  %s210_s19 = sshll.u32 (%p41_p0), %s382_s18, 4  ;;  %s211_s19 = int_to_ptr.vmem [resolvable:$true] %s210_s19 }
  0x11   : > { %261 = vmatpush3.msra.mxu0 %v429_v3  ;;  %s320_s22 = scalar_lea.vmem (%p41_p0), %s211_s19, 256  ;;  %p325_p2 = scmp.lt.s32.totalorder (%p41_p0), %s211_s19, %s211_s19 }
  0x12   : > { %263 = vmatmul.mubr.msk.f32.vlgmr.msra.gmra.mxu0 %vm53_vm3, %v368_v8  ;;  %p321_p1 = scmp.ne.s32.totalorder (%p41_p0), %s211_s19, %s320_s22  ;;  %p326_p3 = scmp.lt.s32.totalorder (%p41_p0), %s320_s22, %s320_s22 }
  0x14   :  { %p327_p4 = por (%p41_p0), %p326_p3, %p325_p2 }
  0x16   :  { %p328_p5 = pnand (%p41_p0), %p327_p4, %p321_p1 }
  0xd2   : > { %v123_v13 = vpop.f32.mrf.mxu0 }
  0xd3   : > { %v127_v14 = vadd.f32 %v123_v13, %v52_v12 }
  0xd4   : > { %v264_v15 = vpop.f32.mrf.mxu0 }
  0xd5   : > { %312 = vtanh.f32 %v127_v14  ;;  %v247_v17 = vmul.f32 -1.442695, %v127_v14 }
  0xd7   : > { %314 = vpow2.f32 %v247_v17 }
  0xe2   : > { %v313_v16 = vpop.eup %312 }
  0xe3   : > { %141 = vrot.lane.b32.xlu0 %v313_v16, %s377_s8 }
  0xe4   : > { %v315_v18 = vpop.eup %314 }
  0xe5   : > { %v131_v19 = vadd.f32 1.0, %v315_v18 }
  0xe7   : > { %136 = vrot.lane.b32.xlu0 %v364_v9, %s377_s8  ;;  %316 = vrcp.f32 %v131_v19 }
  0xeb   : > { %160 = vperm.xlu0 %308, %v418_v0  }
  0xef   : > { %311 = vset.pattern.permute.xlu0 %v379_v24 }
  0xf4   : > { %v317_v20 = vpop.eup %316 }
 0x155   : > { %v142_v21 = vpop.permute.xlu0 %141 }
 0x156   : > { %v144_v22 = vmul.f32 %v317_v20, %v142_v21 }
 0x158   : > { %146 = vrot.lane.b32.xlu1 %v144_v22, %s377_s8 }
 0x159   : > { %v137_v25 = vpop.permute.xlu0 %136 }
 0x15a   : > { %v139_v26 = vmul.f32 %v317_v20, %v137_v25 }
 0x166   : > { %v161_v36 = vpop.permute.xlu0 %160 }
 0x167   : > { %vm162_vm4 = vcmp.lt.s32.totalorder %v158_v35, %v161_v36 }
 0x168   : > { %v248_v38 = vsel %vm162_vm4, 1.0, %v375_v11 }
 0x169   : > { %v170_v39 = vsub.f32 1.0, %v248_v38 }
 0x16b   : > { %v178_v41 = vmul.f32 %v364_v9, %v170_v39  ;;  %v171_v45 = vmul.f32 %v368_v8, %v170_v39 }
 0x1ca   : > { %v147_v27 = vpop.permute.xlu1 %146 }
 0x1cb   : > { %v149_v28 = vadd.f32 %v147_v27, %v139_v26 }
 0x1cd   : > { %318 = vtanh.f32 %v149_v28 }
 0x1da   : > { %v319_v29 = vpop.eup %318 }
 0x1db   : > { %152 = vrot.lane.b32.xlu1 %v319_v29, %s377_s8 }
 0x1df   : > { %189 = vperm.xlu1 %309, %v184_v30  }
 0x1e3   : > { %310 = vset.pattern.permute.xlu1 %v379_v24 }
 0x1e4   : > { %193 = vperm.xlu1 %310, %v184_v30  }
 0x1e8   : > { %174 = vrot.lane.b32.xlu1 %v149_v28, %s380_s12 }
 0x24d   : > { %v153_v31 = vpop.permute.xlu1 %152 }
 0x24e   : > { %v155_v32 = vmul.f32 %v317_v20, %v153_v31 }
 0x250   : > { %166 = vrot.lane.b32.xlu0 %v155_v32, %s381_s14 }
 0x25a   : > { %v190_v37 = vpop.permute.xlu1 %189 }
 0x25f   : > { %v194_v40 = vpop.permute.xlu1 %193 }
 0x260   : > { %v196_v48 = vsel %vm35_vm1, %v190_v37, %v194_v40 }
 0x263   : > { %v175_v42 = vpop.permute.xlu1 %174 }
 0x264   : > { %v177_v43 = vmul.f32 %v248_v38, %v175_v42 }
 0x266   : > { %v179_v44 = vadd.f32 %v178_v41, %v177_v43  }
 0x268   : > { %v532_v9 = vmov %v179_v44  ;;  %201 = vst.msk [vmem:[#allocation3] sm:$0x3] (%p41_p0), %vm24_vm0, %v179_v44 }
 0x2c2   : > { %v167_v46 = vpop.permute.xlu0 %166 }
 0x2c3   : > { %v169_v47 = vmul.f32 %v248_v38, %v167_v46 }
 0x2c5   : > { %v172_v49 = vadd.f32 %v171_v45, %v169_v47   ;;  %182 = vst.msk [vmem:[%s180_s15] sm:$0x3] %vm24_vm0, %v169_v47  ;;  %v197_v50 = vmul.f32 %v196_v48, %v169_v47  ;;  %43 = sbr.rel (!%p41_p0) target bundleno = 9 (0x9), region = 58 }
 0x2c7   : > { %v198_v51 = vadd.f32 %v360_v10, %v197_v50   ;;  %v533_v8 = vmov %v172_v49  ;;  %200 = vst.msk [vmem:[#allocation2] sm:$0x3] (%p41_p0), %vm24_vm0, %v172_v49 }
 0x2c9   : > { %v531_v10 = vmov %v198_v51  ;;  %v203_v53 = vadd.f32 (%p41_p0), %v202_v52, %v198_v51 }
 0x2cb   :  { %204 = vst.msk [vmem:[%s530_s5] sm:$0x3] %vm24_vm0, %v203_v53 }
 0x2cc   :  { %331 = shalt.err (!%p328_p5)
}
 0x2cd   :  { %s383_s1 = smov 32   ;;  %s384_s3 = smov 2  }
 0x2ce   :  { %216 = dma.vmem_to_hbm [thread:$0]  %s211_s19, 256, %s529_s4, [#allocation5], %s383_s1, %s383_s1, %s384_s3  }
 0x2cf   :  { %356 = dma.done.wait [#allocation5], 256  }
 0x2d0   :  { %357 = vsyncadd [#allocation5], 4294967040 }
 0x2d1   :  { %224 = vsyncpa [#allocation5], 1 }

</bundles_post_ra>
